<compile_context>
chip_gen: v5e
topology: v5e:2x2
jax: 0.10.0
libtpu: 0.0.40
codegen_flags: <defaults>
</compile_context>

<pallas_src>
import functools

import jax
import jax.numpy as jnp
from jax.experimental import pallas as pl
from jax.experimental.pallas import tpu as pltpu

LANE = 128


def _round_up(x, m):
    return ((x + m - 1) // m) * m


# ---------------------------------------------------------------------------
# Pass 1 kernel:  H = relu( A @ (X @ W1 + b1) )        (per row-block, K-tiled)
# ---------------------------------------------------------------------------
def _pass1_kernel(x_ref, adj_ref, w1_ref, b1_ref, h_ref, acc_ref):
    k = pl.program_id(1)

    @pl.when(k == 0)
    def _():
        acc_ref[...] = jnp.zeros_like(acc_ref)

    x = x_ref[...]                                        # (tk, din) f32
    if x.shape[1] == 1:
        # input_dim == 1: VPU broadcast-multiply keeps the MXU free for propagation.
        t = x * w1_ref[...] + b1_ref[...]                 # (tk, hp) f32
    else:
        t = jnp.dot(x, w1_ref[...], preferred_element_type=jnp.float32) + b1_ref[...]

    # Propagation tile: bf16 operands, f32 accumulation on the MXU.
    acc_ref[...] += jnp.dot(adj_ref[...], t.astype(jnp.bfloat16),
                            preferred_element_type=jnp.float32)

    @pl.when(k == pl.num_programs(1) - 1)
    def _():
        h_ref[...] = jnp.maximum(acc_ref[...], 0.0).astype(h_ref.dtype)


# ---------------------------------------------------------------------------
# Pass 2 kernel:  OUT = A @ (H @ W2 + b2)               (per row-block, K-tiled)
# ---------------------------------------------------------------------------
def _pass2_kernel(h_ref, adj_ref, w2_ref, b2_ref, o_ref, acc_ref):
    k = pl.program_id(1)

    @pl.when(k == 0)
    def _():
        acc_ref[...] = jnp.zeros_like(acc_ref)

    t = jnp.dot(h_ref[...], w2_ref[...], preferred_element_type=jnp.float32) + b2_ref[...]
    acc_ref[...] += jnp.dot(adj_ref[...], t.astype(jnp.bfloat16),
                            preferred_element_type=jnp.float32)

    @pl.when(k == pl.num_programs(1) - 1)
    def _():
        o_ref[...] = acc_ref[...].astype(o_ref.dtype)


# ---------------------------------------------------------------------------
# One streaming propagation pass:  A @ (feat @ W + b)   [+ per-kernel epilogue]
# ---------------------------------------------------------------------------
def _propagate(kernel, feat, adj_bf16, w, b, out_dtype, *, tm, tk):
    np_, _ = adj_bf16.shape
    fin = feat.shape[1]
    fout = w.shape[1]
    grid = (np_ // tm, np_ // tk)              # rows parallel, reduction (neighbors) LAST
    grid_spec = pltpu.PrefetchScalarGridSpec(
        num_scalar_prefetch=0,
        grid=grid,
        in_specs=[
            pl.BlockSpec((tk, fin), lambda i, k: (k, 0)),    # source-node features
            pl.BlockSpec((tm, tk), lambda i, k: (i, k)),     # adjacency tile (bf16, streamed)
            pl.BlockSpec((fin, fout), lambda i, k: (0, 0)),  # weight (small, resident)
            pl.BlockSpec((1, fout), lambda i, k: (0, 0)),    # bias
        ],
        out_specs=pl.BlockSpec((tm, fout), lambda i, k: (i, 0)),   # resident across k
        scratch_shapes=[pltpu.VMEM((tm, fout), jnp.float32)],      # f32 accumulator
    )
    return pl.pallas_call(
        kernel,
        out_shape=jax.ShapeDtypeStruct((np_, fout), out_dtype),
        grid_spec=grid_spec,
        compiler_params=pltpu.CompilerParams(
            dimension_semantics=("parallel", "arbitrary"),
            vmem_limit_bytes=48 * 1024 * 1024,   # headroom below v7x's 64 MiB physical VMEM
        ),
    )(feat, adj_bf16, w, b)


# ---------------------------------------------------------------------------
# Full forward:  out = A @ ( relu(A @ (X W1 + b1)) @ W2 + b2 )
# ---------------------------------------------------------------------------
@functools.partial(jax.jit, static_argnames=("tile",))
def gnn_forward(x, adj, w1, b1, w2, b2, *, tile=512):
    """x: [N, in_dim] f32, adj: [N, N] f32 row-normalized mean-aggregation matrix."""
    n, din = x.shape
    hidden = w1.shape[1]
    out_dim = w2.shape[1]

    # --- pad to TPU-friendly shapes (sliced back out below) ------------------
    t = min(tile, _round_up(n, LANE))        # row / reduction tile (multiple of 128)
    np_ = _round_up(n, t)                    # padded node count
    hp = _round_up(hidden, LANE)             # lane-dense hidden width
    op = _round_up(out_dim, LANE)            # lane-dense output width

    x_p = jnp.zeros((np_, din), jnp.float32).at[:n, :].set(x)
    adj_p = jnp.zeros((np_, np_), jnp.float32).at[:n, :n].set(adj).astype(jnp.bfloat16)
    w1_p = jnp.zeros((din, hp), jnp.float32).at[:, :hidden].set(w1)
    b1_p = jnp.zeros((1, hp), jnp.float32).at[:, :hidden].set(b1)
    w2_p = jnp.zeros((hp, op), jnp.float32).at[:hidden, :out_dim].set(w2)
    b2_p = jnp.zeros((1, op), jnp.float32).at[:, :out_dim].set(b2)

    # --- pass 1: H = relu(A @ (X W1 + b1)) -----------------------------------
    h = _propagate(_pass1_kernel, x_p, adj_p, w1_p, b1_p, jnp.float32, tm=t, tk=t)
    # --- pass 2: OUT = A @ (H W2 + b2) ---------------------------------------
    out = _propagate(_pass2_kernel, h, adj_p, w2_p, b2_p, jnp.float32, tm=t, tk=t)
    return out[:n, :out_dim]


# ---------------------------------------------------------------------------
# Helpers: dense mean-aggregation matrix, Linear init, f32 reference
# ---------------------------------------------------------------------------
def build_mean_adj(edge_index, num_nodes):
    """A[i, j] = 1/in_deg(i) for edge j -> i (src = row 0, dst = row 1)."""
    src, dst = edge_index[0], edge_index[1]
    a = jnp.zeros((num_nodes, num_nodes), jnp.float32)
    a = a.at[dst, src].add(1.0)
    deg = a.sum(axis=1, keepdims=True)
    return a / jnp.maximum(deg, 1.0)


def init_linear(key, fan_in, fan_out):
    """Deterministic nn.Linear-style init: U(-1/sqrt(fan_in), 1/sqrt(fan_in))."""
    kw, kb = jax.random.split(key)
    bound = 1.0 / jnp.sqrt(float(fan_in))
    w = jax.random.uniform(kw, (fan_in, fan_out), jnp.float32, -bound, bound)
    b = jax.random.uniform(kb, (1, fan_out), jnp.float32, -bound, bound)
    return w, b


def reference_forward(x, adj, w1, b1, w2, b2):
    h = adj @ (x @ w1 + b1)
    h = jnp.maximum(h, 0.0)
    return adj @ (h @ w2 + b2)


if __name__ == "__main__":
    input_dim, hidden_dim, output_dim = 1, 16, 1
    num_nodes = 3

    # Module's graph: edges 0->1 and 0->2 after edge_index.t() (row 0 = src, row 1 = dst).
    edge_index = jnp.array([[0, 0], [1, 2]], dtype=jnp.int32)
    # Module's node features.
    x = jnp.array([[0.5], [0.3], [0.2]], dtype=jnp.float32)

    key = jax.random.PRNGKey(0)
    k1, k2 = jax.random.split(key)
    w1, b1 = init_linear(k1, input_dim, hidden_dim)
    w2, b2 = init_linear(k2, hidden_dim, output_dim)

    adj = build_mean_adj(edge_index, num_nodes)

    out = gnn_forward(x, adj, w1, b1, w2, b2)
    out = jax.block_until_ready(out)

    ref = reference_forward(x, adj, w1, b1, w2, b2)
    assert out.shape == (num_nodes, output_dim)
    # bf16 adjacency / message operands -> slightly looser tolerance than pure f32.
    assert jnp.allclose(out, ref, atol=3e-2, rtol=3e-2), (out, ref)

    print("KERNEL_OK")
</pallas_src>

<mosaic_0001>
module attributes {stable_mosaic.version = 11 : i64} {
  func.func @_pass1_kernel(%arg0: i32, %arg1: i32, %arg2: memref<128x1xf32, #tpu.memory_space<vmem>>, %arg3: memref<128x128xbf16, #tpu.memory_space<vmem>>, %arg4: memref<1x128xf32, #tpu.memory_space<vmem>>, %arg5: memref<1x128xf32, #tpu.memory_space<vmem>>, %arg6: memref<128x128xf32, #tpu.memory_space<vmem>>, %arg7: memref<128x128xf32, #tpu.memory_space<vmem>>) attributes {dimension_semantics = [#tpu.dimension_semantics<parallel>, #tpu.dimension_semantics<arbitrary>], iteration_bounds = array<i64: 1, 1>, scalar_prefetch = 0 : i64, scratch_operands = 1 : i64, tpu.core_type = #tpu.core_type<tc>, window_params = [{transform_indices = @transform_0, window_bounds = array<i64: 128, 1>}, {transform_indices = @transform_1, window_bounds = array<i64: 128, 128>}, {pipeline_mode = #tpu.pipeline_mode<synchronous>, transform_indices = @transform_2, window_bounds = array<i64: 1, 128>}, {pipeline_mode = #tpu.pipeline_mode<synchronous>, transform_indices = @transform_3, window_bounds = array<i64: 1, 128>}, {transform_indices = @transform_4, window_bounds = array<i64: 128, 128>}]} {
    %c0_i32 = arith.constant 0 : i32
    %0 = arith.cmpi eq, %arg1, %c0_i32 : i32
    %1 = arith.extui %0 : i1 to i32
    %c0_i32_0 = arith.constant 0 : i32
    %2 = arith.cmpi ne, %1, %c0_i32_0 : i32
    scf.if %2 {
      %cst_14 = arith.constant 0.000000e+00 : f32
      %20 = vector.broadcast %cst_14 : f32 to vector<128x128xf32>
      %c0_15 = arith.constant 0 : index
      %c0_16 = arith.constant 0 : index
      %21 = vector.load %arg7[%c0_15, %c0_16] : memref<128x128xf32, #tpu.memory_space<vmem>>, vector<128x128xf32>
      tpu.vector_store %arg7[%c0_15, %c0_16], %20 {strides = array<i32>} : memref<128x128xf32, #tpu.memory_space<vmem>>, vector<128x128xf32>,
    } else {
    }
    %c0 = arith.constant 0 : index
    %c0_1 = arith.constant 0 : index
    %3 = vector.load %arg2[%c0, %c0_1] : memref<128x1xf32, #tpu.memory_space<vmem>>, vector<128x1xf32>
    %c0_2 = arith.constant 0 : index
    %c0_3 = arith.constant 0 : index
    %4 = vector.load %arg4[%c0_2, %c0_3] : memref<1x128xf32, #tpu.memory_space<vmem>>, vector<1x128xf32>
    %5 = vector.broadcast %3 : vector<128x1xf32> to vector<128x128xf32>
    %6 = vector.broadcast %4 : vector<1x128xf32> to vector<128x128xf32>
    %7 = arith.mulf %5, %6 : vector<128x128xf32>
    %c0_4 = arith.constant 0 : index
    %c0_5 = arith.constant 0 : index
    %8 = vector.load %arg5[%c0_4, %c0_5] : memref<1x128xf32, #tpu.memory_space<vmem>>, vector<1x128xf32>
    %9 = vector.broadcast %8 : vector<1x128xf32> to vector<128x128xf32>
    %10 = arith.addf %7, %9 : vector<128x128xf32>
    %c0_6 = arith.constant 0 : index
    %c0_7 = arith.constant 0 : index
    %11 = vector.load %arg7[%c0_6, %c0_7] : memref<128x128xf32, #tpu.memory_space<vmem>>, vector<128x128xf32>
    %c0_8 = arith.constant 0 : index
    %c0_9 = arith.constant 0 : index
    %12 = vector.load %arg3[%c0_8, %c0_9] : memref<128x128xbf16, #tpu.memory_space<vmem>>, vector<128x128xbf16>
    %13 = arith.truncf %10 : vector<128x128xf32> to vector<128x128xbf16>
    %cst = arith.constant dense<0.000000e+00> : vector<128x128xf32>
    %14 = tpu.matmul %12, %13, %cst {dimension_numbers = #tpu.dot_dimension_numbers<[1], [0], [0], [1], [0, 0, 1, 1], [], []>} : vector<128x128xbf16>, vector<128x128xbf16>, vector<128x128xf32> -> vector<128x128xf32>
    %15 = arith.addf %11, %14 : vector<128x128xf32>
    %c0_10 = arith.constant 0 : index
    %c0_11 = arith.constant 0 : index
    %16 = vector.load %arg7[%c0_10, %c0_11] : memref<128x128xf32, #tpu.memory_space<vmem>>, vector<128x128xf32>
    tpu.vector_store %arg7[%c0_10, %c0_11], %15 {strides = array<i32>} : memref<128x128xf32, #tpu.memory_space<vmem>>, vector<128x128xf32>,
    %c0_i32_12 = arith.constant 0 : i32
    %17 = arith.cmpi eq, %arg1, %c0_i32_12 : i32
    %18 = arith.extui %17 : i1 to i32
    %c0_i32_13 = arith.constant 0 : i32
    %19 = arith.cmpi ne, %18, %c0_i32_13 : i32
    scf.if %19 {
      %c0_14 = arith.constant 0 : index
      %c0_15 = arith.constant 0 : index
      %20 = vector.load %arg7[%c0_14, %c0_15] : memref<128x128xf32, #tpu.memory_space<vmem>>, vector<128x128xf32>
      %cst_16 = arith.constant 0.000000e+00 : f32
      %21 = vector.broadcast %cst_16 : f32 to vector<128x128xf32>
      %22 = arith.maximumf %20, %21 : vector<128x128xf32>
      %c0_17 = arith.constant 0 : index
      %c0_18 = arith.constant 0 : index
      %23 = vector.load %arg6[%c0_17, %c0_18] : memref<128x128xf32, #tpu.memory_space<vmem>>, vector<128x128xf32>
      tpu.vector_store %arg6[%c0_17, %c0_18], %22 {strides = array<i32>} : memref<128x128xf32, #tpu.memory_space<vmem>>, vector<128x128xf32>,
    } else {
    }
    return
  }
  func.func @transform_0(%arg0: i32, %arg1: i32) -> (i32, i32) {
    %c0_i32 = arith.constant 0 : i32
    %c0_i32_0 = arith.constant 0 : i32
    return %arg1, %c0_i32 : i32, i32
  }
  func.func @transform_1(%arg0: i32, %arg1: i32) -> (i32, i32) {
    %c0_i32 = arith.constant 0 : i32
    return %arg0, %arg1 : i32, i32
  }
  func.func @transform_2(%arg0: i32, %arg1: i32) -> (i32, i32) {
    %c0_i32 = arith.constant 0 : i32
    %c0_i32_0 = arith.constant 0 : i32
    %c0_i32_1 = arith.constant 0 : i32
    return %c0_i32, %c0_i32_0 : i32, i32
  }
  func.func @transform_3(%arg0: i32, %arg1: i32) -> (i32, i32) {
    %c0_i32 = arith.constant 0 : i32
    %c0_i32_0 = arith.constant 0 : i32
    %c0_i32_1 = arith.constant 0 : i32
    return %c0_i32, %c0_i32_0 : i32, i32
  }
  func.func @transform_4(%arg0: i32, %arg1: i32) -> (i32, i32) {
    %c0_i32 = arith.constant 0 : i32
    %c0_i32_0 = arith.constant 0 : i32
    return %arg0, %c0_i32 : i32, i32
  }
}

module attributes {stable_mosaic.version = 11 : i64} {
  func.func @_pass2_kernel(%arg0: i32, %arg1: i32, %arg2: memref<128x128xf32, #tpu.memory_space<vmem>>, %arg3: memref<128x128xbf16, #tpu.memory_space<vmem>>, %arg4: memref<128x128xf32, #tpu.memory_space<vmem>>, %arg5: memref<1x128xf32, #tpu.memory_space<vmem>>, %arg6: memref<128x128xf32, #tpu.memory_space<vmem>>, %arg7: memref<128x128xf32, #tpu.memory_space<vmem>>) attributes {dimension_semantics = [#tpu.dimension_semantics<parallel>, #tpu.dimension_semantics<arbitrary>], iteration_bounds = array<i64: 1, 1>, scalar_prefetch = 0 : i64, scratch_operands = 1 : i64, tpu.core_type = #tpu.core_type<tc>, window_params = [{transform_indices = @transform_0, window_bounds = array<i64: 128, 128>}, {transform_indices = @transform_1, window_bounds = array<i64: 128, 128>}, {pipeline_mode = #tpu.pipeline_mode<synchronous>, transform_indices = @transform_2, window_bounds = array<i64: 128, 128>}, {pipeline_mode = #tpu.pipeline_mode<synchronous>, transform_indices = @transform_3, window_bounds = array<i64: 1, 128>}, {transform_indices = @transform_4, window_bounds = array<i64: 128, 128>}]} {
    %c0_i32 = arith.constant 0 : i32
    %0 = arith.cmpi eq, %arg1, %c0_i32 : i32
    %1 = arith.extui %0 : i1 to i32
    %c0_i32_0 = arith.constant 0 : i32
    %2 = arith.cmpi ne, %1, %c0_i32_0 : i32
    scf.if %2 {
      %cst_15 = arith.constant 0.000000e+00 : f32
      %18 = vector.broadcast %cst_15 : f32 to vector<128x128xf32>
      %c0_16 = arith.constant 0 : index
      %c0_17 = arith.constant 0 : index
      %19 = vector.load %arg7[%c0_16, %c0_17] : memref<128x128xf32, #tpu.memory_space<vmem>>, vector<128x128xf32>
      tpu.vector_store %arg7[%c0_16, %c0_17], %18 {strides = array<i32>} : memref<128x128xf32, #tpu.memory_space<vmem>>, vector<128x128xf32>,
    } else {
    }
    %c0 = arith.constant 0 : index
    %c0_1 = arith.constant 0 : index
    %3 = vector.load %arg2[%c0, %c0_1] : memref<128x128xf32, #tpu.memory_space<vmem>>, vector<128x128xf32>
    %c0_2 = arith.constant 0 : index
    %c0_3 = arith.constant 0 : index
    %4 = vector.load %arg4[%c0_2, %c0_3] : memref<128x128xf32, #tpu.memory_space<vmem>>, vector<128x128xf32>
    %cst = arith.constant dense<0.000000e+00> : vector<128x128xf32>
    %5 = tpu.matmul %3, %4, %cst {dimension_numbers = #tpu.dot_dimension_numbers<[1], [0], [0], [1], [0, 0, 1, 1], [], []>} : vector<128x128xf32>, vector<128x128xf32>, vector<128x128xf32> -> vector<128x128xf32>
    %c0_4 = arith.constant 0 : index
    %c0_5 = arith.constant 0 : index
    %6 = vector.load %arg5[%c0_4, %c0_5] : memref<1x128xf32, #tpu.memory_space<vmem>>, vector<1x128xf32>
    %7 = vector.broadcast %6 : vector<1x128xf32> to vector<128x128xf32>
    %8 = arith.addf %5, %7 : vector<128x128xf32>
    %c0_6 = arith.constant 0 : index
    %c0_7 = arith.constant 0 : index
    %9 = vector.load %arg7[%c0_6, %c0_7] : memref<128x128xf32, #tpu.memory_space<vmem>>, vector<128x128xf32>
    %c0_8 = arith.constant 0 : index
    %c0_9 = arith.constant 0 : index
    %10 = vector.load %arg3[%c0_8, %c0_9] : memref<128x128xbf16, #tpu.memory_space<vmem>>, vector<128x128xbf16>
    %11 = arith.truncf %8 : vector<128x128xf32> to vector<128x128xbf16>
    %cst_10 = arith.constant dense<0.000000e+00> : vector<128x128xf32>
    %12 = tpu.matmul %10, %11, %cst_10 {dimension_numbers = #tpu.dot_dimension_numbers<[1], [0], [0], [1], [0, 0, 1, 1], [], []>} : vector<128x128xbf16>, vector<128x128xbf16>, vector<128x128xf32> -> vector<128x128xf32>
    %13 = arith.addf %9, %12 : vector<128x128xf32>
    %c0_11 = arith.constant 0 : index
    %c0_12 = arith.constant 0 : index
    %14 = vector.load %arg7[%c0_11, %c0_12] : memref<128x128xf32, #tpu.memory_space<vmem>>, vector<128x128xf32>
    tpu.vector_store %arg7[%c0_11, %c0_12], %13 {strides = array<i32>} : memref<128x128xf32, #tpu.memory_space<vmem>>, vector<128x128xf32>,
    %c0_i32_13 = arith.constant 0 : i32
    %15 = arith.cmpi eq, %arg1, %c0_i32_13 : i32
    %16 = arith.extui %15 : i1 to i32
    %c0_i32_14 = arith.constant 0 : i32
    %17 = arith.cmpi ne, %16, %c0_i32_14 : i32
    scf.if %17 {
      %c0_15 = arith.constant 0 : index
      %c0_16 = arith.constant 0 : index
      %18 = vector.load %arg7[%c0_15, %c0_16] : memref<128x128xf32, #tpu.memory_space<vmem>>, vector<128x128xf32>
      %c0_17 = arith.constant 0 : index
      %c0_18 = arith.constant 0 : index
      %19 = vector.load %arg6[%c0_17, %c0_18] : memref<128x128xf32, #tpu.memory_space<vmem>>, vector<128x128xf32>
      tpu.vector_store %arg6[%c0_17, %c0_18], %18 {strides = array<i32>} : memref<128x128xf32, #tpu.memory_space<vmem>>, vector<128x128xf32>,
    } else {
    }
    return
  }
  func.func @transform_0(%arg0: i32, %arg1: i32) -> (i32, i32) {
    %c0_i32 = arith.constant 0 : i32
    %c0_i32_0 = arith.constant 0 : i32
    return %arg1, %c0_i32 : i32, i32
  }
  func.func @transform_1(%arg0: i32, %arg1: i32) -> (i32, i32) {
    %c0_i32 = arith.constant 0 : i32
    return %arg0, %arg1 : i32, i32
  }
  func.func @transform_2(%arg0: i32, %arg1: i32) -> (i32, i32) {
    %c0_i32 = arith.constant 0 : i32
    %c0_i32_0 = arith.constant 0 : i32
    %c0_i32_1 = arith.constant 0 : i32
    return %c0_i32, %c0_i32_0 : i32, i32
  }
  func.func @transform_3(%arg0: i32, %arg1: i32) -> (i32, i32) {
    %c0_i32 = arith.constant 0 : i32
    %c0_i32_0 = arith.constant 0 : i32
    %c0_i32_1 = arith.constant 0 : i32
    return %c0_i32, %c0_i32_0 : i32, i32
  }
  func.func @transform_4(%arg0: i32, %arg1: i32) -> (i32, i32) {
    %c0_i32 = arith.constant 0 : i32
    %c0_i32_0 = arith.constant 0 : i32
    return %arg0, %c0_i32 : i32, i32
  }
}

</mosaic_0001>

<bundles_post_ra>
// kernel: gnn_forward.2
= control target key start
LH: loop header
LB: loop body
LE: loop exit
PB: predicated region body
PF: predicated region fallthrough
CT: control target
= control target key end

     0   :  { %v467_v0 = vmov 0   ;;  %s655_s0 = inlined_call_operand.vmem [shape: f32[128,1], index: 0, kind: input, shape index: {}]   ;;  %s656_s2 = inlined_call_operand.vmem [shape: f32[1,128], index: 2, kind: input, shape index: {}]   ;;  %s657_s3 = inlined_call_operand.vmem [shape: f32[1,128], index: 3, kind: input, shape index: {}]   ;;  %s658_s1 = inlined_call_operand.vmem [shape: bf16[128,128], index: 1, kind: input, shape index: {}]   ;;  %s659_s4 = inlined_call_operand.vmem [shape: f32[128,128], index: 4, kind: output, shape index: {}]  }
   0x1   :  { %464 = vset.pattern.permute.xlu2 %v467_v0  ;;  %463 = vset.pattern.permute.xlu1 %v467_v0  ;;  %v51_v1 = vld [vmem:[%s655_s0 + $0x70] sm:$0xff]  ;;  %v49_v2 = vld [vmem:[%s655_s0 + $0x60] sm:$0xff]  ;;  %v50_v4 = vld [vmem:[%s655_s0 + $0x68] sm:$0xff] }
   0x2   :  { %v47_v3 = vld [vmem:[%s655_s0 + $0x50] sm:$0xff]  ;;  %462 = vset.pattern.permute.xlu0 %v467_v0  ;;  %116 = vperm.xlu1 %463, %v49_v2   ;;  %v52_v5 = vld [vmem:[%s655_s0 + $0x78] sm:$0xff]  ;;  %v46_v7 = vld [vmem:[%s655_s0 + $0x48] sm:$0xff] }
   0x3   :  { %126 = vperm.xlu0 %462, %v51_v1   ;;  %106 = vperm.xlu2 %464, %v47_v3   ;;  %v48_v6 = vld [vmem:[%s655_s0 + $0x58] sm:$0xff]  ;;  %v45_v8 = vld [vmem:[%s655_s0 + $0x40] sm:$0xff]  ;;  %v43_v9 = vld [vmem:[%s655_s0 + $0x30] sm:$0xff] }
   0x4   :  { %v41_v10 = vld [vmem:[%s655_s0 + $0x20] sm:$0xff]  ;;  %v44_v11 = vld [vmem:[%s655_s0 + $0x38] sm:$0xff]  ;;  %v42_v12 = vld [vmem:[%s655_s0 + $0x28] sm:$0xff] }
   0x5   :  { %v40_v13 = vld [vmem:[%s655_s0 + $0x18] sm:$0xff]  ;;  %v39_v14 = vld [vmem:[%s655_s0 + $0x10] sm:$0xff]  ;;  %v37_v15 = vld [vmem:[%s655_s0] sm:$0xff] }
   0x6   :  { %v38_v16 = vld [vmem:[%s655_s0 + $0x8] sm:$0xff]  ;;  %v544_v17 = vld [vmem:[%s656_s2] ss:$0 sm:$0xff] }
   0x7   :  { %v549_v19 = vld [vmem:[%s657_s3] ss:$0 sm:$0xff] }
   0xa   :  { %121 = vperm.xlu1 %463, %v50_v4  }
   0xb   :  { %131 = vperm.xlu0 %462, %v52_v5   ;;  %111 = vperm.xlu2 %464, %v48_v6  }
  0x12   :  { %101 = vperm.xlu1 %463, %v46_v7  }
  0x13   :  { %96 = vperm.xlu0 %462, %v45_v8   ;;  %86 = vperm.xlu2 %464, %v43_v9  }
  0x1a   :  { %76 = vperm.xlu1 %463, %v41_v10  }
  0x1b   :  { %91 = vperm.xlu0 %462, %v44_v11   ;;  %81 = vperm.xlu2 %464, %v42_v12   ;;  %v429_v11 = vld [vmem:[%s658_s1] sm:$0xff]  ;;  %v431_v12 = vld [vmem:[%s658_s1 + $0x10] sm:$0xff] }
  0x22   :  { %71 = vperm.xlu1 %463, %v40_v13   ;;  %v433_v13 = vld [vmem:[%s658_s1 + $0x20] sm:$0xff] }
  0x23   :  { %66 = vperm.xlu0 %462, %v39_v14   ;;  %56 = vperm.xlu2 %464, %v37_v15   ;;  %v435_v14 = vld [vmem:[%s658_s1 + $0x30] sm:$0xff]  ;;  %v430_v15 = vld [vmem:[%s658_s1 + $0x8] sm:$0xff] }
  0x2b   :  { %61 = vperm.xlu0 %462, %v38_v16   ;;  %v432_v16 = vld [vmem:[%s658_s1 + $0x18] sm:$0xff] }
  0x5d   :  { %v107_v18 = vpop.permute.xlu2 %106 }
  0x5e   :  { %v147_v20 = vmul.f32 %v544_v17, %v107_v18  ;;  %v436_v18 = vld [vmem:[%s658_s1 + $0x38] sm:$0xff] }
  0x60   :  { %v167_v21 = vadd.f32 %v549_v19, %v147_v20 }
  0x65   :  { %v112_v22 = vpop.permute.xlu2 %111 }
  0x66   :  { %v148_v23 = vmul.f32 %v544_v17, %v112_v22 }
  0x68   :  { %v168_v24 = vadd.f32 %v549_v19, %v148_v23 }
  0x6a   :  { %v210_v25 = vpack.c.bf16 %v168_v24, %v167_v21 }
  0x6d   :  { %v87_v26 = vpop.permute.xlu2 %86 }
  0x6e   :  { %v143_v27 = vmul.f32 %v544_v17, %v87_v26 }
  0x70   :  { %v163_v28 = vadd.f32 %v549_v19, %v143_v27 }
  0x74   :  { %v117_v29 = vpop.permute.xlu1 %116 }
  0x75   :  { %v127_v30 = vpop.permute.xlu0 %126  ;;  %v149_v31 = vmul.f32 %v544_v17, %v117_v29  ;;  %v82_v32 = vpop.permute.xlu2 %81 }
  0x76   :  { %v151_v33 = vmul.f32 %v544_v17, %v127_v30  ;;  %v142_v34 = vmul.f32 %v544_v17, %v82_v32 }
  0x77   :  { %v169_v35 = vadd.f32 %v549_v19, %v149_v31 }
  0x78   :  { %v171_v36 = vadd.f32 %v549_v19, %v151_v33  ;;  %v162_v37 = vadd.f32 %v549_v19, %v142_v34 }
  0x7c   :  { %v122_v38 = vpop.permute.xlu1 %121 }
  0x7d   :  { %v132_v39 = vpop.permute.xlu0 %131  ;;  %v150_v40 = vmul.f32 %v544_v17, %v122_v38  ;;  %v57_v41 = vpop.permute.xlu2 %56 }
  0x7e   :  { %v152_v42 = vmul.f32 %v544_v17, %v132_v39  ;;  %v137_v43 = vmul.f32 %v544_v17, %v57_v41 }
  0x7f   :  { %v170_v44 = vadd.f32 %v549_v19, %v150_v40 }
  0x80   :  { %v172_v45 = vadd.f32 %v549_v19, %v152_v42  ;;  %v157_v46 = vadd.f32 %v549_v19, %v137_v43 }
  0x81   :  { %v211_v47 = vpack.c.bf16 %v170_v44, %v169_v35 }
  0x82   :  { %v212_v48 = vpack.c.bf16 %v172_v45, %v171_v36 }
  0x84   :  { %261 = vmatpush.bf16.msra.mxu0 %v212_v48  ;;  %437 = vmatpush.bf16.msra.mxu1 %v212_v48  ;;  %v102_v49 = vpop.permute.xlu1 %101 }
  0x85   :  { %438 = vmatpush.bf16.msra.mxu2 %v212_v48  ;;  %439 = vmatpush.bf16.msra.mxu3 %v212_v48  ;;  %v146_v50 = vmul.f32 %v544_v17, %v102_v49  ;;  %v97_v51 = vpop.permute.xlu0 %96 }
  0x86   :  { %v145_v52 = vmul.f32 %v544_v17, %v97_v51 }
  0x87   :  { %v166_v53 = vadd.f32 %v549_v19, %v146_v50 }
  0x88   :  { %v165_v54 = vadd.f32 %v549_v19, %v145_v52  ;;  %262 = vmatpush.bf16.msra.mxu0 %v211_v47  ;;  %440 = vmatpush.bf16.msra.mxu1 %v211_v47 }
  0x89   :  { %441 = vmatpush.bf16.msra.mxu2 %v211_v47  ;;  %442 = vmatpush.bf16.msra.mxu3 %v211_v47 }
  0x8a   :  { %v209_v55 = vpack.c.bf16 %v166_v53, %v165_v54 }
  0x8c   :  { %263 = vmatpush.bf16.msra.mxu0 %v210_v25  ;;  %443 = vmatpush.bf16.msra.mxu1 %v210_v25  ;;  %v77_v56 = vpop.permute.xlu1 %76 }
  0x8d   :  { %444 = vmatpush.bf16.msra.mxu2 %v210_v25  ;;  %445 = vmatpush.bf16.msra.mxu3 %v210_v25  ;;  %v92_v57 = vpop.permute.xlu0 %91  ;;  %v141_v58 = vmul.f32 %v544_v17, %v77_v56 }
  0x8e   :  { %v144_v59 = vmul.f32 %v544_v17, %v92_v57 }
  0x8f   :  { %v161_v60 = vadd.f32 %v549_v19, %v141_v58 }
  0x90   :  { %v164_v61 = vadd.f32 %v549_v19, %v144_v59  ;;  %264 = vmatpush.bf16.msra.mxu0 %v209_v55  ;;  %446 = vmatpush.bf16.msra.mxu1 %v209_v55 }
  0x91   :  { %v207_v62 = vpack.c.bf16 %v162_v37, %v161_v60  ;;  %447 = vmatpush.bf16.msra.mxu2 %v209_v55  ;;  %448 = vmatpush.bf16.msra.mxu3 %v209_v55 }
  0x92   :  { %v208_v63 = vpack.c.bf16 %v164_v61, %v163_v28 }
  0x94   :  { %265 = vmatpush.bf16.msra.mxu0 %v208_v63  ;;  %449 = vmatpush.bf16.msra.mxu1 %v208_v63  ;;  %v72_v0 = vpop.permute.xlu1 %71 }
  0x95   :  { %450 = vmatpush.bf16.msra.mxu2 %v208_v63  ;;  %451 = vmatpush.bf16.msra.mxu3 %v208_v63  ;;  %v140_v1 = vmul.f32 %v544_v17, %v72_v0  ;;  %v67_v2 = vpop.permute.xlu0 %66 }
  0x96   :  { %v139_v3 = vmul.f32 %v544_v17, %v67_v2 }
  0x97   :  { %v160_v4 = vadd.f32 %v549_v19, %v140_v1 }
  0x98   :  { %v159_v5 = vadd.f32 %v549_v19, %v139_v3  ;;  %266 = vmatpush.bf16.msra.mxu0 %v207_v62  ;;  %452 = vmatpush.bf16.msra.mxu1 %v207_v62 }
  0x99   :  { %453 = vmatpush.bf16.msra.mxu2 %v207_v62  ;;  %454 = vmatpush.bf16.msra.mxu3 %v207_v62 }
  0x9a   :  { %v206_v6 = vpack.c.bf16 %v160_v4, %v159_v5 }
  0x9c   :  { %267 = vmatpush.bf16.msra.mxu0 %v206_v6  ;;  %455 = vmatpush.bf16.msra.mxu1 %v206_v6 }
  0x9d   :  { %456 = vmatpush.bf16.msra.mxu2 %v206_v6  ;;  %457 = vmatpush.bf16.msra.mxu3 %v206_v6  ;;  %v62_v7 = vpop.permute.xlu0 %61 }
  0x9e   :  { %v138_v8 = vmul.f32 %v544_v17, %v62_v7  ;;  %v434_v17 = vld [vmem:[%s658_s1 + $0x28] sm:$0xff] }
  0xa0   :  { %v158_v9 = vadd.f32 %v549_v19, %v138_v8 }
  0xa2   :  { %v205_v10 = vpack.c.bf16 %v158_v9, %v157_v46 }
  0xa4   :  { %268 = vmatpush.bf16.msra.mxu0 %v205_v10  ;;  %458 = vmatpush.bf16.msra.mxu1 %v205_v10 }
  0xa5   :  { %459 = vmatpush.bf16.msra.mxu2 %v205_v10  ;;  %460 = vmatpush.bf16.msra.mxu3 %v205_v10 }
  0xa7   :  { %269 = vmatmul.bf16.vlgmr.msra.gmra.mxu0 %v429_v11  ;;  %279 = vmatmul.bf16.vlgmr.msra.gmra.mxu1 %v431_v12 }
  0xa8   :  { %289 = vmatmul.bf16.vlgmr.msra.gmra.mxu2 %v433_v13  ;;  %299 = vmatmul.bf16.vlgmr.msra.gmra.mxu3 %v435_v14 }
  0xb7   :  { %274 = vmatmul.bf16.gmra.mxu0 %v430_v15  ;;  %284 = vmatmul.bf16.gmra.mxu1 %v432_v16 }
  0xb8   :  { %294 = vmatmul.bf16.gmra.mxu2 %v434_v17  ;;  %304 = vmatmul.bf16.gmra.mxu3 %v436_v18 }
 0x124   :  { %v270_v19 = vpop.f32.mrf.mxu0  ;;  %v280_v20 = vpop.f32.mrf.mxu1 }
 0x125   :  { %v361_v21 = vmax.f32 %v270_v19, 0.0  ;;  %v365_v22 = vmax.f32 %v280_v20, 0.0 }
 0x127   :  { %377 = vst [vmem:[%s659_s4] sm:$0xff] %v361_v21 }
 0x128   :  { %381 = vst [vmem:[%s659_s4 + $0x20] sm:$0xff] %v365_v22 }
 0x12b   :  { %v290_v23 = vpop.f32.mrf.mxu2  ;;  %v300_v24 = vpop.f32.mrf.mxu3 }
 0x12c   :  { %v369_v25 = vmax.f32 %v290_v23, 0.0  ;;  %v373_v26 = vmax.f32 %v300_v24, 0.0  ;;  %v272_v27 = vpop.f32.mrf.mxu0  ;;  %v282_v28 = vpop.f32.mrf.mxu1 }
 0x12d   :  { %v362_v29 = vmax.f32 %v272_v27, 0.0  ;;  %v366_v30 = vmax.f32 %v282_v28, 0.0 }
 0x12e   :  { %385 = vst [vmem:[%s659_s4 + $0x40] sm:$0xff] %v369_v25 }
 0x12f   :  { %389 = vst [vmem:[%s659_s4 + $0x60] sm:$0xff] %v373_v26 }
 0x130   :  { %378 = vst [vmem:[%s659_s4 + $0x8] sm:$0xff] %v362_v29 }
 0x131   :  { %382 = vst [vmem:[%s659_s4 + $0x28] sm:$0xff] %v366_v30 }
 0x133   :  { %v292_v31 = vpop.f32.mrf.mxu2  ;;  %v302_v32 = vpop.f32.mrf.mxu3 }
 0x134   :  { %v370_v33 = vmax.f32 %v292_v31, 0.0  ;;  %v374_v34 = vmax.f32 %v302_v32, 0.0  ;;  %v275_v35 = vpop.f32.mrf.mxu0  ;;  %v285_v36 = vpop.f32.mrf.mxu1 }
 0x135   :  { %v363_v37 = vmax.f32 %v275_v35, 0.0  ;;  %v367_v38 = vmax.f32 %v285_v36, 0.0 }
 0x136   :  { %386 = vst [vmem:[%s659_s4 + $0x48] sm:$0xff] %v370_v33 }
 0x137   :  { %390 = vst [vmem:[%s659_s4 + $0x68] sm:$0xff] %v374_v34 }
 0x138   :  { %379 = vst [vmem:[%s659_s4 + $0x10] sm:$0xff] %v363_v37 }
 0x139   :  { %383 = vst [vmem:[%s659_s4 + $0x30] sm:$0xff] %v367_v38 }
 0x13b   :  { %v295_v39 = vpop.f32.mrf.mxu2  ;;  %v305_v40 = vpop.f32.mrf.mxu3 }
 0x13c   :  { %v371_v41 = vmax.f32 %v295_v39, 0.0  ;;  %v375_v42 = vmax.f32 %v305_v40, 0.0  ;;  %v277_v43 = vpop.f32.mrf.mxu0  ;;  %v287_v44 = vpop.f32.mrf.mxu1 }
 0x13d   :  { %v364_v45 = vmax.f32 %v277_v43, 0.0  ;;  %v368_v46 = vmax.f32 %v287_v44, 0.0 }
 0x13e   :  { %387 = vst [vmem:[%s659_s4 + $0x50] sm:$0xff] %v371_v41 }
 0x13f   :  { %391 = vst [vmem:[%s659_s4 + $0x70] sm:$0xff] %v375_v42 }
 0x140   :  { %380 = vst [vmem:[%s659_s4 + $0x18] sm:$0xff] %v364_v45 }
 0x141   :  { %384 = vst [vmem:[%s659_s4 + $0x38] sm:$0xff] %v368_v46 }
 0x143   :  { %v297_v47 = vpop.f32.mrf.mxu2  ;;  %v307_v48 = vpop.f32.mrf.mxu3 }
 0x144   :  { %v372_v49 = vmax.f32 %v297_v47, 0.0  ;;  %v376_v50 = vmax.f32 %v307_v48, 0.0 }
 0x146   :  { %388 = vst [vmem:[%s659_s4 + $0x58] sm:$0xff] %v372_v49 }
 0x147   :  { %392 = vst [vmem:[%s659_s4 + $0x78] sm:$0xff] %v376_v50 }

// kernel: gnn_forward.3
= control target key start
LH: loop header
LB: loop body
LE: loop exit
PB: predicated region body
PF: predicated region fallthrough
CT: control target
= control target key end

     0   :  { %s607_s2 = inlined_call_operand.vmem [shape: f32[128,128], index: 2, kind: input, shape index: {}]   ;;  %s608_s3 = inlined_call_operand.vmem [shape: f32[1,128], index: 3, kind: input, shape index: {}]   ;;  %s609_s0 = inlined_call_operand.vmem [shape: f32[128,128], index: 0, kind: input, shape index: {}]   ;;  %s610_s1 = inlined_call_operand.vmem [shape: bf16[128,128], index: 1, kind: input, shape index: {}]   ;;  %s611_s4 = inlined_call_operand.vmem [shape: f32[128,128], index: 4, kind: output, shape index: {}]  }
   0x1   :  { %v68_v0 = vld [vmem:[%s607_s2 + $0x78] sm:$0xff]  ;;  %v67_v1 = vld [vmem:[%s607_s2 + $0x70] sm:$0xff]  ;;  %v66_v2 = vld [vmem:[%s607_s2 + $0x68] sm:$0xff] }
   0x2   :  { %386 = vmatpush.msra.mxu2 %v68_v0  ;;  %73 = vmatpush.msra.mxu0 %v68_v0  ;;  %v65_v3 = vld [vmem:[%s607_s2 + $0x60] sm:$0xff]  ;;  %v64_v4 = vld [vmem:[%s607_s2 + $0x58] sm:$0xff]  ;;  %v63_v5 = vld [vmem:[%s607_s2 + $0x50] sm:$0xff] }
   0x3   :  { %v62_v6 = vld [vmem:[%s607_s2 + $0x48] sm:$0xff]  ;;  %v61_v7 = vld [vmem:[%s607_s2 + $0x40] sm:$0xff]  ;;  %v60_v8 = vld [vmem:[%s607_s2 + $0x38] sm:$0xff] }
   0x4   :  { %387 = vmatpush.msra.mxu2 %v67_v1  ;;  %74 = vmatpush.msra.mxu0 %v67_v1  ;;  %v59_v9 = vld [vmem:[%s607_s2 + $0x30] sm:$0xff]  ;;  %v58_v10 = vld [vmem:[%s607_s2 + $0x28] sm:$0xff]  ;;  %v57_v11 = vld [vmem:[%s607_s2 + $0x20] sm:$0xff] }
   0x5   :  { %v56_v12 = vld [vmem:[%s607_s2 + $0x18] sm:$0xff]  ;;  %v55_v13 = vld [vmem:[%s607_s2 + $0x10] sm:$0xff]  ;;  %v54_v14 = vld [vmem:[%s607_s2 + $0x8] sm:$0xff] }
   0x6   :  { %388 = vmatpush.msra.mxu2 %v66_v2  ;;  %75 = vmatpush.msra.mxu0 %v66_v2  ;;  %v53_v15 = vld [vmem:[%s607_s2] sm:$0xff]  ;;  %v46_v18 = vld [vmem:[%s609_s0 + $0x48] sm:$0xff]  ;;  %v47_v20 = vld [vmem:[%s609_s0 + $0x50] sm:$0xff] }
   0x7   :  { %v45_v16 = vld [vmem:[%s609_s0 + $0x40] sm:$0xff]  ;;  %v38_v19 = vld [vmem:[%s609_s0 + $0x8] sm:$0xff]  ;;  %v39_v21 = vld [vmem:[%s609_s0 + $0x10] sm:$0xff] }
   0x8   :  { %389 = vmatpush.msra.mxu2 %v65_v3  ;;  %76 = vmatpush.msra.mxu0 %v65_v3  ;;  %v37_v17 = vld [vmem:[%s609_s0] sm:$0xff]  ;;  %v48_v22 = vld [vmem:[%s609_s0 + $0x58] sm:$0xff]  ;;  %v50_v26 = vld [vmem:[%s609_s0 + $0x68] sm:$0xff] }
   0x9   :  { %v40_v23 = vld [vmem:[%s609_s0 + $0x18] sm:$0xff]  ;;  %v49_v24 = vld [vmem:[%s609_s0 + $0x60] sm:$0xff]  ;;  %v42_v27 = vld [vmem:[%s609_s0 + $0x28] sm:$0xff] }
   0xa   :  { %390 = vmatpush.msra.mxu2 %v64_v4  ;;  %77 = vmatpush.msra.mxu0 %v64_v4  ;;  %v41_v25 = vld [vmem:[%s609_s0 + $0x20] sm:$0xff]  ;;  %v51_v28 = vld [vmem:[%s609_s0 + $0x70] sm:$0xff]  ;;  %v52_v30 = vld [vmem:[%s609_s0 + $0x78] sm:$0xff] }
   0xb   :  { %v43_v29 = vld [vmem:[%s609_s0 + $0x30] sm:$0xff]  ;;  %v44_v31 = vld [vmem:[%s609_s0 + $0x38] sm:$0xff]  ;;  %v410_v32 = vld [vmem:[%s608_s3] ss:$0 sm:$0xff] }
   0xc   :  { %391 = vmatpush.msra.mxu2 %v63_v5  ;;  %78 = vmatpush.msra.mxu0 %v63_v5 }
   0xe   :  { %392 = vmatpush.msra.mxu2 %v62_v6  ;;  %79 = vmatpush.msra.mxu0 %v62_v6 }
  0x10   :  { %393 = vmatpush.msra.mxu2 %v61_v7  ;;  %80 = vmatpush.msra.mxu0 %v61_v7 }
  0x12   :  { %394 = vmatpush.msra.mxu2 %v60_v8  ;;  %81 = vmatpush.msra.mxu0 %v60_v8 }
  0x14   :  { %395 = vmatpush.msra.mxu2 %v59_v9  ;;  %82 = vmatpush.msra.mxu0 %v59_v9  ;;  %v378_v9 = vld [vmem:[%s610_s1] sm:$0xff] }
  0x16   :  { %396 = vmatpush.msra.mxu2 %v58_v10  ;;  %83 = vmatpush.msra.mxu0 %v58_v10  ;;  %v382_v10 = vld [vmem:[%s610_s1 + $0x20] sm:$0xff] }
  0x18   :  { %397 = vmatpush.msra.mxu2 %v57_v11  ;;  %84 = vmatpush.msra.mxu0 %v57_v11  ;;  %v379_v11 = vld [vmem:[%s610_s1 + $0x8] sm:$0xff] }
  0x1a   :  { %398 = vmatpush.msra.mxu2 %v56_v12  ;;  %85 = vmatpush.msra.mxu0 %v56_v12  ;;  %v383_v12 = vld [vmem:[%s610_s1 + $0x28] sm:$0xff] }
  0x1c   :  { %399 = vmatpush.msra.mxu2 %v55_v13  ;;  %86 = vmatpush.msra.mxu0 %v55_v13  ;;  %v380_v13 = vld [vmem:[%s610_s1 + $0x10] sm:$0xff] }
  0x1e   :  { %400 = vmatpush.msra.mxu2 %v54_v14  ;;  %87 = vmatpush.msra.mxu0 %v54_v14  ;;  %v384_v14 = vld [vmem:[%s610_s1 + $0x30] sm:$0xff] }
  0x20   :  { %401 = vmatpush.msra.mxu2 %v53_v15  ;;  %88 = vmatpush.msra.mxu0 %v53_v15  ;;  %v381_v15 = vld [vmem:[%s610_s1 + $0x18] sm:$0xff] }
  0x21   :  { %113 = vmatmul.f32.vlgmr.msra.gmra.mxu2 %v45_v16  ;;  %89 = vmatmul.f32.vlgmr.msra.gmra.mxu0 %v37_v17  ;;  %v385_v16 = vld [vmem:[%s610_s1 + $0x38] sm:$0xff] }
  0x29   :  { %116 = vmatmul.f32.gmra.mxu2 %v46_v18  ;;  %92 = vmatmul.f32.gmra.mxu0 %v38_v19 }
  0x31   :  { %119 = vmatmul.f32.gmra.mxu2 %v47_v20  ;;  %95 = vmatmul.f32.gmra.mxu0 %v39_v21 }
  0x39   :  { %122 = vmatmul.f32.gmra.mxu2 %v48_v22  ;;  %98 = vmatmul.f32.gmra.mxu0 %v40_v23 }
  0x41   :  { %125 = vmatmul.f32.gmra.mxu2 %v49_v24  ;;  %101 = vmatmul.f32.gmra.mxu0 %v41_v25 }
  0x49   :  { %128 = vmatmul.f32.gmra.mxu2 %v50_v26  ;;  %104 = vmatmul.f32.gmra.mxu0 %v42_v27 }
  0x51   :  { %131 = vmatmul.f32.gmra.mxu2 %v51_v28  ;;  %107 = vmatmul.f32.gmra.mxu0 %v43_v29 }
  0x59   :  { %134 = vmatmul.f32.gmra.mxu2 %v52_v30  ;;  %110 = vmatmul.f32.gmra.mxu0 %v44_v31 }
  0x9e   :  { %v90_v33 = vpop.f32.mrf.mxu0 }
  0x9f   :  { %v91_v34 = vadd.f32 %v410_v32, %v90_v33 }
  0xa4   :  { %v114_v35 = vpop.f32.mrf.mxu2 }
  0xa5   :  { %v115_v36 = vadd.f32 %v410_v32, %v114_v35 }
  0xa6   :  { %v93_v37 = vpop.f32.mrf.mxu0 }
  0xa7   :  { %v94_v38 = vadd.f32 %v410_v32, %v93_v37 }
  0xa9   :  { %v170_v39 = vpack.c.bf16 %v94_v38, %v91_v34 }
  0xac   :  { %v117_v40 = vpop.f32.mrf.mxu2 }
  0xad   :  { %v118_v41 = vadd.f32 %v410_v32, %v117_v40 }
  0xae   :  { %v96_v44 = vpop.f32.mrf.mxu0 }
  0xaf   :  { %v174_v42 = vpack.c.bf16 %v118_v41, %v115_v36  ;;  %v97_v5 = vadd.f32 %v410_v32, %v96_v44 }
  0xb4   :  { %v120_v43 = vpop.f32.mrf.mxu2 }
  0xb5   :  { %v121_v61 = vadd.f32 %v410_v32, %v120_v43 }
  0xb6   :  { %v99_v46 = vpop.f32.mrf.mxu0 }
  0xb7   :  { %v100_v6 = vadd.f32 %v410_v32, %v99_v46 }
  0xb9   :  { %v171_v8 = vpack.c.bf16 %v100_v6, %v97_v5 }
  0xbc   :  { %v123_v45 = vpop.f32.mrf.mxu2 }
  0xbd   :  { %v124_v59 = vadd.f32 %v410_v32, %v123_v45 }
  0xbe   :  { %v102_v48 = vpop.f32.mrf.mxu0 }
  0xbf   :  { %v175_v62 = vpack.c.bf16 %v124_v59, %v121_v61  ;;  %v103_v2 = vadd.f32 %v410_v32, %v102_v48 }
  0xc4   :  { %v126_v47 = vpop.f32.mrf.mxu2 }
  0xc5   :  { %v127_v58 = vadd.f32 %v410_v32, %v126_v47 }
  0xc6   :  { %v105_v50 = vpop.f32.mrf.mxu0 }
  0xc7   :  { %v106_v3 = vadd.f32 %v410_v32, %v105_v50 }
  0xc9   :  { %v172_v7 = vpack.c.bf16 %v106_v3, %v103_v2 }
  0xcc   :  { %v129_v49 = vpop.f32.mrf.mxu2 }
  0xcd   :  { %v130_v56 = vadd.f32 %v410_v32, %v129_v49 }
  0xce   :  { %v108_v55 = vpop.f32.mrf.mxu0 }
  0xcf   :  { %v176_v60 = vpack.c.bf16 %v130_v56, %v127_v58  ;;  %v109_v0 = vadd.f32 %v410_v32, %v108_v55 }
  0xd4   :  { %v132_v51 = vpop.f32.mrf.mxu2 }
  0xd5   :  { %v133_v53 = vadd.f32 %v410_v32, %v132_v51 }
  0xd6   :  { %v111_v63 = vpop.f32.mrf.mxu0 }
  0xd7   :  { %v112_v1 = vadd.f32 %v410_v32, %v111_v63 }
  0xd9   :  { %v173_v4 = vpack.c.bf16 %v112_v1, %v109_v0 }
  0xdc   :  { %v135_v52 = vpop.f32.mrf.mxu2 }
  0xdd   :  { %v136_v54 = vadd.f32 %v410_v32, %v135_v52 }
  0xdf   :  { %v177_v57 = vpack.c.bf16 %v136_v54, %v133_v53 }
  0xe1   :  { %226 = vmatpush.bf16.msra.mxu1 %v177_v57  ;;  %402 = vmatpush.bf16.msra.mxu3 %v177_v57 }
  0xe5   :  { %227 = vmatpush.bf16.msra.mxu1 %v176_v60  ;;  %403 = vmatpush.bf16.msra.mxu3 %v176_v60 }
  0xe9   :  { %228 = vmatpush.bf16.msra.mxu1 %v175_v62  ;;  %404 = vmatpush.bf16.msra.mxu3 %v175_v62 }
  0xed   :  { %229 = vmatpush.bf16.msra.mxu1 %v174_v42  ;;  %405 = vmatpush.bf16.msra.mxu3 %v174_v42 }
  0xf1   :  { %230 = vmatpush.bf16.msra.mxu1 %v173_v4  ;;  %406 = vmatpush.bf16.msra.mxu3 %v173_v4 }
  0xf5   :  { %231 = vmatpush.bf16.msra.mxu1 %v172_v7  ;;  %407 = vmatpush.bf16.msra.mxu3 %v172_v7 }
  0xf9   :  { %232 = vmatpush.bf16.msra.mxu1 %v171_v8  ;;  %408 = vmatpush.bf16.msra.mxu3 %v171_v8 }
  0xfd   :  { %233 = vmatpush.bf16.msra.mxu1 %v170_v39  ;;  %409 = vmatpush.bf16.msra.mxu3 %v170_v39 }
 0x100   :  { %234 = vmatmul.bf16.vlgmr.msra.gmra.mxu1 %v378_v9  ;;  %254 = vmatmul.bf16.vlgmr.msra.gmra.mxu3 %v382_v10 }
 0x110   :  { %239 = vmatmul.bf16.gmra.mxu1 %v379_v11  ;;  %259 = vmatmul.bf16.gmra.mxu3 %v383_v12 }
 0x120   :  { %244 = vmatmul.bf16.gmra.mxu1 %v380_v13  ;;  %264 = vmatmul.bf16.gmra.mxu3 %v384_v14 }
 0x130   :  { %249 = vmatmul.bf16.gmra.mxu1 %v381_v15  ;;  %269 = vmatmul.bf16.gmra.mxu3 %v385_v16 }
 0x17d   :  { %v235_v17 = vpop.f32.mrf.mxu1 }
 0x17e   :  { %326 = vst [vmem:[%s611_s4] sm:$0xff] %v235_v17 }
 0x183   :  { %v255_v18 = vpop.f32.mrf.mxu3 }
 0x184   :  { %334 = vst [vmem:[%s611_s4 + $0x40] sm:$0xff] %v255_v18 }
 0x185   :  { %v237_v19 = vpop.f32.mrf.mxu1 }
 0x186   :  { %327 = vst [vmem:[%s611_s4 + $0x8] sm:$0xff] %v237_v19 }
 0x18b   :  { %v257_v20 = vpop.f32.mrf.mxu3 }
 0x18c   :  { %335 = vst [vmem:[%s611_s4 + $0x48] sm:$0xff] %v257_v20 }
 0x18d   :  { %v240_v21 = vpop.f32.mrf.mxu1 }
 0x18e   :  { %328 = vst [vmem:[%s611_s4 + $0x10] sm:$0xff] %v240_v21 }
 0x193   :  { %v260_v22 = vpop.f32.mrf.mxu3 }
 0x194   :  { %336 = vst [vmem:[%s611_s4 + $0x50] sm:$0xff] %v260_v22 }
 0x195   :  { %v242_v23 = vpop.f32.mrf.mxu1 }
 0x196   :  { %329 = vst [vmem:[%s611_s4 + $0x18] sm:$0xff] %v242_v23 }
 0x19b   :  { %v262_v24 = vpop.f32.mrf.mxu3 }
 0x19c   :  { %337 = vst [vmem:[%s611_s4 + $0x58] sm:$0xff] %v262_v24 }
 0x19d   :  { %v245_v25 = vpop.f32.mrf.mxu1 }
 0x19e   :  { %330 = vst [vmem:[%s611_s4 + $0x20] sm:$0xff] %v245_v25 }
 0x1a3   :  { %v265_v26 = vpop.f32.mrf.mxu3 }
 0x1a4   :  { %338 = vst [vmem:[%s611_s4 + $0x60] sm:$0xff] %v265_v26 }
 0x1a5   :  { %v247_v27 = vpop.f32.mrf.mxu1 }
 0x1a6   :  { %331 = vst [vmem:[%s611_s4 + $0x28] sm:$0xff] %v247_v27 }
 0x1ab   :  { %v267_v28 = vpop.f32.mrf.mxu3 }
 0x1ac   :  { %339 = vst [vmem:[%s611_s4 + $0x68] sm:$0xff] %v267_v28 }
 0x1ad   :  { %v250_v29 = vpop.f32.mrf.mxu1 }
 0x1ae   :  { %332 = vst [vmem:[%s611_s4 + $0x30] sm:$0xff] %v250_v29 }
 0x1b3   :  { %v270_v30 = vpop.f32.mrf.mxu3 }
 0x1b4   :  { %340 = vst [vmem:[%s611_s4 + $0x70] sm:$0xff] %v270_v30 }
 0x1b5   :  { %v252_v31 = vpop.f32.mrf.mxu1 }
 0x1b6   :  { %333 = vst [vmem:[%s611_s4 + $0x38] sm:$0xff] %v252_v31 }
 0x1bb   :  { %v272_v32 = vpop.f32.mrf.mxu3 }
 0x1bc   :  { %341 = vst [vmem:[%s611_s4 + $0x78] sm:$0xff] %v272_v32 }

</bundles_post_ra>
